<compile_context>
chip_gen: v7x
topology: tpu7x:2x2x1
jax: 0.10.0
libtpu: 0.0.40
codegen_flags: <defaults>
</compile_context>

<pallas_src>
import functools

import jax
import jax.numpy as jnp
from jax.experimental import pallas as pl
from jax.experimental.pallas import tpu as pltpu


def _embed_dropout_gather_kernel(ids_ref, mask_ref, w_hbm, out_ref, rows, sem,
                                 *, token_tile, n_inflight, apply_mask):
    """One grid step gathers `token_tile` embedding rows from HBM.

    ids_ref : SMEM (n_pad,) int32   all token ids (scalar-prefetched)
    mask_ref: VMEM (TT, 1)  float   per-token dropout mask (scale folded in)
    w_hbm   : HBM  (V, D)   float   embedding weight (never resident in VMEM)
    out_ref : VMEM (TT, D)  float   gathered (masked) embeddings for this tile
    rows    : VMEM (TT, D)  float   DMA landing buffer
    sem     : DMA semaphores, shape (n_inflight,)
    """
    t0 = pl.program_id(0) * token_tile

    def start_row(j):
        row = ids_ref[t0 + j]
        pltpu.make_async_copy(
            w_hbm.at[pl.ds(row, 1), :],
            rows.at[pl.ds(j, 1), :],
            sem.at[j % n_inflight],
        ).start()

    def wait_row(j):
        # Same-shaped descriptor; only the semaphore / transfer size matter for wait.
        pltpu.make_async_copy(
            w_hbm.at[pl.ds(0, 1), :],
            rows.at[pl.ds(0, 1), :],
            sem.at[j % n_inflight],
        ).wait()

    # Prime: keep `n_inflight` row DMAs outstanding.
    for j in range(n_inflight):
        start_row(j)

    # Steady state: retire row j, immediately issue row j + n_inflight.
    @pl.loop(0, token_tile - n_inflight)
    def _(j):
        wait_row(j)
        start_row(j + n_inflight)

    # Drain the tail.
    for j in range(token_tile - n_inflight, token_tile):
        wait_row(j)

    gathered = rows[...]
    if apply_mask:
        gathered = gathered * mask_ref[...]   # single (TT, D) multiply, not (V, D)
    out_ref[...] = gathered.astype(out_ref.dtype)


def embedding_dropout(words, weight, key, dropout=0.1, scale=None,
                      *, token_tile=128, max_inflight=8):
    """JAX/Pallas equivalent of EmbeddingDropout.forward(words, dropout, scale).

    Returns (embeddings, row_mask) where row_mask is the (V, 1) dropout mask
    (already divided by keep-prob), i.e. dropout_mask(weight, (V, 1), dropout).
    """
    vocab, dim = weight.shape
    orig_shape = words.shape
    flat = words.reshape(-1).astype(jnp.int32)
    n_tok = flat.shape[0]

    token_tile = max(8, token_tile - token_tile % 8)      # keep sublane multiple
    n_pad = int(pl.cdiv(n_tok, token_tile)) * token_tile
    flat = jnp.pad(flat, (0, n_pad - n_tok))              # padded tokens gather row 0

    # Per-vocab-row dropout mask -- same mask for every occurrence of a word,
    # exactly dropout_mask(weight, (V, 1), dropout) from the PyTorch code.
    if dropout:
        keep = jax.random.bernoulli(key, 1.0 - dropout, (vocab, 1))
        row_mask = keep.astype(weight.dtype) / jnp.asarray(1.0 - dropout, weight.dtype)
    else:
        row_mask = jnp.ones((vocab, 1), weight.dtype)

    # Per-token mask values (tiny O(n_tokens) scalar gather); `scale` folded in here so
    # the kernel applies a single (TT, D) multiply on the gathered rows.
    mask_tok = row_mask[flat]                             # (n_pad, 1)
    if scale is not None:
        mask_tok = mask_tok * jnp.asarray(scale, weight.dtype)
    apply_mask = bool(dropout) or (scale is not None)

    n_inflight = int(min(max_inflight, token_tile))
    grid = (n_pad // token_tile,)

    kernel = functools.partial(
        _embed_dropout_gather_kernel,
        token_tile=token_tile, n_inflight=n_inflight, apply_mask=apply_mask)

    out = pl.pallas_call(
        kernel,
        out_shape=jax.ShapeDtypeStruct((n_pad, dim), weight.dtype),
        grid_spec=pltpu.PrefetchScalarGridSpec(
            num_scalar_prefetch=1,                        # flat ids -> SMEM
            grid=grid,
            in_specs=[
                pl.BlockSpec((token_tile, 1), lambda i, ids: (i, 0)),  # per-token mask
                pl.BlockSpec(memory_space=pl.ANY),                     # weight stays in HBM
            ],
            out_specs=pl.BlockSpec((token_tile, dim), lambda i, ids: (i, 0)),
            scratch_shapes=[
                pltpu.VMEM((token_tile, dim), weight.dtype),           # DMA landing buffer
                pltpu.SemaphoreType.DMA((n_inflight,)),
            ],
        ),
        compiler_params=pltpu.CompilerParams(
            dimension_semantics=("parallel",),            # token tiles are independent
        ),
    )(flat, mask_tok, weight)

    out = out[:n_tok].reshape(*orig_shape, dim)
    return out, row_mask


if __name__ == "__main__":
    # Small shapes consistent with the module: vocab=32, emb dim=128, batch=2, seq=8.
    B, S, V, D = 2, 8, 32, 128
    key = jax.random.PRNGKey(0)
    k_w, k_ids, k_mask = jax.random.split(key, 3)

    # Deterministic "nn.Embedding(V, D)" weight (synthetic init, no checkpoint).
    weight = jax.random.normal(k_w, (V, D), dtype=jnp.float32)
    words = jax.random.randint(k_ids, (B, S), 0, V, dtype=jnp.int32)

    # dropout=0.1 path.
    out, mask = embedding_dropout(words, weight, k_mask, dropout=0.1, scale=None)
    out = jax.block_until_ready(out)
    ref = (mask * weight)[words]
    assert out.shape == (B, S, D)
    assert jnp.allclose(out, ref, atol=1e-5, rtol=1e-5)

    # dropout=0, scale=2.0 path (no dropout mask; scale folded into per-token multiply).
    out0, _ = embedding_dropout(words, weight, k_mask, dropout=0.0, scale=2.0)
    out0 = jax.block_until_ready(out0)
    assert jnp.allclose(out0, 2.0 * weight[words], atol=1e-5, rtol=1e-5)

    # dropout=0, scale=None path (pure gather, mask multiply skipped entirely).
    out1, _ = embedding_dropout(words, weight, k_mask, dropout=0.0, scale=None)
    out1 = jax.block_until_ready(out1)
    assert jnp.allclose(out1, weight[words], atol=1e-5, rtol=1e-5)

    # TODO(synk): padding_idx / max_norm / norm_type / scale_grad_by_freq / sparse flags
    # of nn.Embedding affect training-time weight renorm and gradients only, not this
    # forward lookup.
    print("KERNEL_OK")
</pallas_src>

<mosaic_0001>
module attributes {stable_mosaic.version = 11 : i64} {
  func.func @_embed_dropout_gather_kernel(%arg0: i32, %arg1: memref<128xi32, #tpu.memory_space<smem>>, %arg2: memref<128x1xf32, #tpu.memory_space<vmem>>, %arg3: memref<32x128xf32, #tpu.memory_space<any>>, %arg4: memref<128x128xf32, #tpu.memory_space<vmem>>, %arg5: memref<128x128xf32, #tpu.memory_space<vmem>>, %arg6: memref<8x!tpu.dma_semaphore, #tpu.memory_space<semaphore_mem>>) attributes {dimension_semantics = [#tpu.dimension_semantics<parallel>], iteration_bounds = array<i64: 1>, scalar_prefetch = 1 : i64, scratch_operands = 2 : i64, tpu.core_type = #tpu.core_type<tc>, window_params = [{transform_indices = @transform_0, window_bounds = array<i64: 128, 1>}, {}, {transform_indices = @transform_2, window_bounds = array<i64: 128, 128>}]} {
    %c128_i32 = arith.constant 128 : i32
    %0 = arith.muli %arg0, %c128_i32 : i32
    %c0_i32 = arith.constant 0 : i32
    %1 = arith.addi %0, %c0_i32 : i32
    %2 = arith.index_cast %1 : i32 to index
    %3 = memref.load %arg1[%2] : memref<128xi32, #tpu.memory_space<smem>>
    %c0_i32_0 = arith.constant 0 : i32
    %c0_i32_1 = arith.constant 0 : i32
    %4 = tpu.memref_slice %arg3[%3, %c0_i32_1] : memref<32x128xf32, #tpu.memory_space<any>> -> memref<1x128xf32, #tpu.memory_space<any>>
    %c0_i32_2 = arith.constant 0 : i32
    %c0_i32_3 = arith.constant 0 : i32
    %5 = tpu.memref_slice %arg5[%c0_i32_2, %c0_i32_3] : memref<128x128xf32, #tpu.memory_space<vmem>> -> memref<1x128xf32, #tpu.memory_space<vmem>>
    %6 = tpu.memref_slice %arg6[%c0_i32_0] : memref<8x!tpu.dma_semaphore, #tpu.memory_space<semaphore_mem>> -> memref<1x!tpu.dma_semaphore, #tpu.memory_space<semaphore_mem>>
    %7 = tpu.memref_squeeze %6 : memref<1x!tpu.dma_semaphore, #tpu.memory_space<semaphore_mem>> -> memref<!tpu.dma_semaphore, #tpu.memory_space<semaphore_mem>>
    tpu.enqueue_dma source(%4 : memref<1x128xf32, #tpu.memory_space<any>>) target(%5 : memref<1x128xf32, #tpu.memory_space<vmem>>) target_semaphore(%7 : memref<!tpu.dma_semaphore, #tpu.memory_space<semaphore_mem>>)
    %c1_i32 = arith.constant 1 : i32
    %8 = arith.addi %0, %c1_i32 : i32
    %9 = arith.index_cast %8 : i32 to index
    %10 = memref.load %arg1[%9] : memref<128xi32, #tpu.memory_space<smem>>
    %c1_i32_4 = arith.constant 1 : i32
    %c0_i32_5 = arith.constant 0 : i32
    %11 = tpu.memref_slice %arg3[%10, %c0_i32_5] : memref<32x128xf32, #tpu.memory_space<any>> -> memref<1x128xf32, #tpu.memory_space<any>>
    %c1_i32_6 = arith.constant 1 : i32
    %c0_i32_7 = arith.constant 0 : i32
    %12 = tpu.memref_slice %arg5[%c1_i32_6, %c0_i32_7] : memref<128x128xf32, #tpu.memory_space<vmem>> -> memref<1x128xf32, #tpu.memory_space<vmem>>
    %13 = tpu.memref_slice %arg6[%c1_i32_4] : memref<8x!tpu.dma_semaphore, #tpu.memory_space<semaphore_mem>> -> memref<1x!tpu.dma_semaphore, #tpu.memory_space<semaphore_mem>>
    %14 = tpu.memref_squeeze %13 : memref<1x!tpu.dma_semaphore, #tpu.memory_space<semaphore_mem>> -> memref<!tpu.dma_semaphore, #tpu.memory_space<semaphore_mem>>
    tpu.enqueue_dma source(%11 : memref<1x128xf32, #tpu.memory_space<any>>) target(%12 : memref<1x128xf32, #tpu.memory_space<vmem>>) target_semaphore(%14 : memref<!tpu.dma_semaphore, #tpu.memory_space<semaphore_mem>>)
    %c2_i32 = arith.constant 2 : i32
    %15 = arith.addi %0, %c2_i32 : i32
    %16 = arith.index_cast %15 : i32 to index
    %17 = memref.load %arg1[%16] : memref<128xi32, #tpu.memory_space<smem>>
    %c2_i32_8 = arith.constant 2 : i32
    %c0_i32_9 = arith.constant 0 : i32
    %18 = tpu.memref_slice %arg3[%17, %c0_i32_9] : memref<32x128xf32, #tpu.memory_space<any>> -> memref<1x128xf32, #tpu.memory_space<any>>
    %c2_i32_10 = arith.constant 2 : i32
    %c0_i32_11 = arith.constant 0 : i32
    %19 = tpu.memref_slice %arg5[%c2_i32_10, %c0_i32_11] : memref<128x128xf32, #tpu.memory_space<vmem>> -> memref<1x128xf32, #tpu.memory_space<vmem>>
    %20 = tpu.memref_slice %arg6[%c2_i32_8] : memref<8x!tpu.dma_semaphore, #tpu.memory_space<semaphore_mem>> -> memref<1x!tpu.dma_semaphore, #tpu.memory_space<semaphore_mem>>
    %21 = tpu.memref_squeeze %20 : memref<1x!tpu.dma_semaphore, #tpu.memory_space<semaphore_mem>> -> memref<!tpu.dma_semaphore, #tpu.memory_space<semaphore_mem>>
    tpu.enqueue_dma source(%18 : memref<1x128xf32, #tpu.memory_space<any>>) target(%19 : memref<1x128xf32, #tpu.memory_space<vmem>>) target_semaphore(%21 : memref<!tpu.dma_semaphore, #tpu.memory_space<semaphore_mem>>)
    %c3_i32 = arith.constant 3 : i32
    %22 = arith.addi %0, %c3_i32 : i32
    %23 = arith.index_cast %22 : i32 to index
    %24 = memref.load %arg1[%23] : memref<128xi32, #tpu.memory_space<smem>>
    %c3_i32_12 = arith.constant 3 : i32
    %c0_i32_13 = arith.constant 0 : i32
    %25 = tpu.memref_slice %arg3[%24, %c0_i32_13] : memref<32x128xf32, #tpu.memory_space<any>> -> memref<1x128xf32, #tpu.memory_space<any>>
    %c3_i32_14 = arith.constant 3 : i32
    %c0_i32_15 = arith.constant 0 : i32
    %26 = tpu.memref_slice %arg5[%c3_i32_14, %c0_i32_15] : memref<128x128xf32, #tpu.memory_space<vmem>> -> memref<1x128xf32, #tpu.memory_space<vmem>>
    %27 = tpu.memref_slice %arg6[%c3_i32_12] : memref<8x!tpu.dma_semaphore, #tpu.memory_space<semaphore_mem>> -> memref<1x!tpu.dma_semaphore, #tpu.memory_space<semaphore_mem>>
    %28 = tpu.memref_squeeze %27 : memref<1x!tpu.dma_semaphore, #tpu.memory_space<semaphore_mem>> -> memref<!tpu.dma_semaphore, #tpu.memory_space<semaphore_mem>>
    tpu.enqueue_dma source(%25 : memref<1x128xf32, #tpu.memory_space<any>>) target(%26 : memref<1x128xf32, #tpu.memory_space<vmem>>) target_semaphore(%28 : memref<!tpu.dma_semaphore, #tpu.memory_space<semaphore_mem>>)
    %c4_i32 = arith.constant 4 : i32
    %29 = arith.addi %0, %c4_i32 : i32
    %30 = arith.index_cast %29 : i32 to index
    %31 = memref.load %arg1[%30] : memref<128xi32, #tpu.memory_space<smem>>
    %c4_i32_16 = arith.constant 4 : i32
    %c0_i32_17 = arith.constant 0 : i32
    %32 = tpu.memref_slice %arg3[%31, %c0_i32_17] : memref<32x128xf32, #tpu.memory_space<any>> -> memref<1x128xf32, #tpu.memory_space<any>>
    %c4_i32_18 = arith.constant 4 : i32
    %c0_i32_19 = arith.constant 0 : i32
    %33 = tpu.memref_slice %arg5[%c4_i32_18, %c0_i32_19] : memref<128x128xf32, #tpu.memory_space<vmem>> -> memref<1x128xf32, #tpu.memory_space<vmem>>
    %34 = tpu.memref_slice %arg6[%c4_i32_16] : memref<8x!tpu.dma_semaphore, #tpu.memory_space<semaphore_mem>> -> memref<1x!tpu.dma_semaphore, #tpu.memory_space<semaphore_mem>>
    %35 = tpu.memref_squeeze %34 : memref<1x!tpu.dma_semaphore, #tpu.memory_space<semaphore_mem>> -> memref<!tpu.dma_semaphore, #tpu.memory_space<semaphore_mem>>
    tpu.enqueue_dma source(%32 : memref<1x128xf32, #tpu.memory_space<any>>) target(%33 : memref<1x128xf32, #tpu.memory_space<vmem>>) target_semaphore(%35 : memref<!tpu.dma_semaphore, #tpu.memory_space<semaphore_mem>>)
    %c5_i32 = arith.constant 5 : i32
    %36 = arith.addi %0, %c5_i32 : i32
    %37 = arith.index_cast %36 : i32 to index
    %38 = memref.load %arg1[%37] : memref<128xi32, #tpu.memory_space<smem>>
    %c5_i32_20 = arith.constant 5 : i32
    %c0_i32_21 = arith.constant 0 : i32
    %39 = tpu.memref_slice %arg3[%38, %c0_i32_21] : memref<32x128xf32, #tpu.memory_space<any>> -> memref<1x128xf32, #tpu.memory_space<any>>
    %c5_i32_22 = arith.constant 5 : i32
    %c0_i32_23 = arith.constant 0 : i32
    %40 = tpu.memref_slice %arg5[%c5_i32_22, %c0_i32_23] : memref<128x128xf32, #tpu.memory_space<vmem>> -> memref<1x128xf32, #tpu.memory_space<vmem>>
    %41 = tpu.memref_slice %arg6[%c5_i32_20] : memref<8x!tpu.dma_semaphore, #tpu.memory_space<semaphore_mem>> -> memref<1x!tpu.dma_semaphore, #tpu.memory_space<semaphore_mem>>
    %42 = tpu.memref_squeeze %41 : memref<1x!tpu.dma_semaphore, #tpu.memory_space<semaphore_mem>> -> memref<!tpu.dma_semaphore, #tpu.memory_space<semaphore_mem>>
    tpu.enqueue_dma source(%39 : memref<1x128xf32, #tpu.memory_space<any>>) target(%40 : memref<1x128xf32, #tpu.memory_space<vmem>>) target_semaphore(%42 : memref<!tpu.dma_semaphore, #tpu.memory_space<semaphore_mem>>)
    %c6_i32 = arith.constant 6 : i32
    %43 = arith.addi %0, %c6_i32 : i32
    %44 = arith.index_cast %43 : i32 to index
    %45 = memref.load %arg1[%44] : memref<128xi32, #tpu.memory_space<smem>>
    %c6_i32_24 = arith.constant 6 : i32
    %c0_i32_25 = arith.constant 0 : i32
    %46 = tpu.memref_slice %arg3[%45, %c0_i32_25] : memref<32x128xf32, #tpu.memory_space<any>> -> memref<1x128xf32, #tpu.memory_space<any>>
    %c6_i32_26 = arith.constant 6 : i32
    %c0_i32_27 = arith.constant 0 : i32
    %47 = tpu.memref_slice %arg5[%c6_i32_26, %c0_i32_27] : memref<128x128xf32, #tpu.memory_space<vmem>> -> memref<1x128xf32, #tpu.memory_space<vmem>>
    %48 = tpu.memref_slice %arg6[%c6_i32_24] : memref<8x!tpu.dma_semaphore, #tpu.memory_space<semaphore_mem>> -> memref<1x!tpu.dma_semaphore, #tpu.memory_space<semaphore_mem>>
    %49 = tpu.memref_squeeze %48 : memref<1x!tpu.dma_semaphore, #tpu.memory_space<semaphore_mem>> -> memref<!tpu.dma_semaphore, #tpu.memory_space<semaphore_mem>>
    tpu.enqueue_dma source(%46 : memref<1x128xf32, #tpu.memory_space<any>>) target(%47 : memref<1x128xf32, #tpu.memory_space<vmem>>) target_semaphore(%49 : memref<!tpu.dma_semaphore, #tpu.memory_space<semaphore_mem>>)
    %c7_i32 = arith.constant 7 : i32
    %50 = arith.addi %0, %c7_i32 : i32
    %51 = arith.index_cast %50 : i32 to index
    %52 = memref.load %arg1[%51] : memref<128xi32, #tpu.memory_space<smem>>
    %c7_i32_28 = arith.constant 7 : i32
    %c0_i32_29 = arith.constant 0 : i32
    %53 = tpu.memref_slice %arg3[%52, %c0_i32_29] : memref<32x128xf32, #tpu.memory_space<any>> -> memref<1x128xf32, #tpu.memory_space<any>>
    %c7_i32_30 = arith.constant 7 : i32
    %c0_i32_31 = arith.constant 0 : i32
    %54 = tpu.memref_slice %arg5[%c7_i32_30, %c0_i32_31] : memref<128x128xf32, #tpu.memory_space<vmem>> -> memref<1x128xf32, #tpu.memory_space<vmem>>
    %55 = tpu.memref_slice %arg6[%c7_i32_28] : memref<8x!tpu.dma_semaphore, #tpu.memory_space<semaphore_mem>> -> memref<1x!tpu.dma_semaphore, #tpu.memory_space<semaphore_mem>>
    %56 = tpu.memref_squeeze %55 : memref<1x!tpu.dma_semaphore, #tpu.memory_space<semaphore_mem>> -> memref<!tpu.dma_semaphore, #tpu.memory_space<semaphore_mem>>
    tpu.enqueue_dma source(%53 : memref<1x128xf32, #tpu.memory_space<any>>) target(%54 : memref<1x128xf32, #tpu.memory_space<vmem>>) target_semaphore(%56 : memref<!tpu.dma_semaphore, #tpu.memory_space<semaphore_mem>>)
    %c0_i32_32 = arith.constant 0 : i32
    %c120_i32 = arith.constant 120 : i32
    %57 = arith.addi %c0_i32_32, %c120_i32 : i32
    %c1_i32_33 = arith.constant 1 : i32
    scf.for %arg7 = %c0_i32_32 to %57 step %c1_i32_33  : i32 {
      %c1_i32_80 = arith.constant 1 : i32
      %95 = arith.muli %arg7, %c1_i32_80 : i32
      %c0_i32_81 = arith.constant 0 : i32
      %96 = arith.addi %c0_i32_81, %95 : i32
      %c8_i32 = arith.constant 8 : i32
      %c0_i32_82 = arith.constant 0 : i32
      %97 = arith.cmpi eq, %c8_i32, %c0_i32_82 : i32
      %c1_i32_83 = arith.constant 1 : i32
      %98 = arith.select %97, %c1_i32_83, %c8_i32 : i32
      %99 = arith.remsi %96, %98 : i32
      %c0_i32_84 = arith.constant 0 : i32
      %100 = arith.cmpi ne, %99, %c0_i32_84 : i32
      %c0_i32_85 = arith.constant 0 : i32
      %101 = arith.cmpi slt, %99, %c0_i32_85 : i32
      %c0_i32_86 = arith.constant 0 : i32
      %102 = arith.cmpi slt, %98, %c0_i32_86 : i32
      %103 = arith.xori %101, %102 : i1
      %104 = arith.andi %103, %100 : i1
      %105 = arith.addi %99, %98 : i32
      %106 = arith.select %104, %105, %99 : i32
      %c0_i32_87 = arith.constant 0 : i32
      %c0_i32_88 = arith.constant 0 : i32
      %107 = tpu.memref_slice %arg3[%c0_i32_87, %c0_i32_88] : memref<32x128xf32, #tpu.memory_space<any>> -> memref<1x128xf32, #tpu.memory_space<any>>
      %c0_i32_89 = arith.constant 0 : i32
      %c0_i32_90 = arith.constant 0 : i32
      %108 = tpu.memref_slice %arg5[%c0_i32_89, %c0_i32_90] : memref<128x128xf32, #tpu.memory_space<vmem>> -> memref<1x128xf32, #tpu.memory_space<vmem>>
      %109 = tpu.memref_slice %arg6[%106] : memref<8x!tpu.dma_semaphore, #tpu.memory_space<semaphore_mem>> -> memref<1x!tpu.dma_semaphore, #tpu.memory_space<semaphore_mem>>
      %110 = tpu.memref_squeeze %109 : memref<1x!tpu.dma_semaphore, #tpu.memory_space<semaphore_mem>> -> memref<!tpu.dma_semaphore, #tpu.memory_space<semaphore_mem>>
      tpu.wait_dma2 semaphore(%110 : memref<!tpu.dma_semaphore, #tpu.memory_space<semaphore_mem>>) src(%107 : memref<1x128xf32, #tpu.memory_space<any>>) dst(%108 : memref<1x128xf32, #tpu.memory_space<vmem>>)
      %c8_i32_91 = arith.constant 8 : i32
      %111 = arith.addi %96, %c8_i32_91 : i32
      %112 = arith.addi %0, %111 : i32
      %113 = arith.index_cast %112 : i32 to index
      %114 = memref.load %arg1[%113] : memref<128xi32, #tpu.memory_space<smem>>
      %c8_i32_92 = arith.constant 8 : i32
      %c0_i32_93 = arith.constant 0 : i32
      %115 = arith.cmpi eq, %c8_i32_92, %c0_i32_93 : i32
      %c1_i32_94 = arith.constant 1 : i32
      %116 = arith.select %115, %c1_i32_94, %c8_i32_92 : i32
      %117 = arith.remsi %111, %116 : i32
      %c0_i32_95 = arith.constant 0 : i32
      %118 = arith.cmpi ne, %117, %c0_i32_95 : i32
      %c0_i32_96 = arith.constant 0 : i32
      %119 = arith.cmpi slt, %117, %c0_i32_96 : i32
      %c0_i32_97 = arith.constant 0 : i32
      %120 = arith.cmpi slt, %116, %c0_i32_97 : i32
      %121 = arith.xori %119, %120 : i1
      %122 = arith.andi %121, %118 : i1
      %123 = arith.addi %117, %116 : i32
      %124 = arith.select %122, %123, %117 : i32
      %c0_i32_98 = arith.constant 0 : i32
      %125 = tpu.memref_slice %arg3[%114, %c0_i32_98] : memref<32x128xf32, #tpu.memory_space<any>> -> memref<1x128xf32, #tpu.memory_space<any>>
      %c0_i32_99 = arith.constant 0 : i32
      %126 = tpu.memref_slice %arg5[%111, %c0_i32_99] : memref<128x128xf32, #tpu.memory_space<vmem>> -> memref<1x128xf32, #tpu.memory_space<vmem>>
      %127 = tpu.memref_slice %arg6[%124] : memref<8x!tpu.dma_semaphore, #tpu.memory_space<semaphore_mem>> -> memref<1x!tpu.dma_semaphore, #tpu.memory_space<semaphore_mem>>
      %128 = tpu.memref_squeeze %127 : memref<1x!tpu.dma_semaphore, #tpu.memory_space<semaphore_mem>> -> memref<!tpu.dma_semaphore, #tpu.memory_space<semaphore_mem>>
      tpu.enqueue_dma source(%125 : memref<1x128xf32, #tpu.memory_space<any>>) target(%126 : memref<1x128xf32, #tpu.memory_space<vmem>>) target_semaphore(%128 : memref<!tpu.dma_semaphore, #tpu.memory_space<semaphore_mem>>)
    }
    %c120_i32_34 = arith.constant 120 : i32
    %c0_i32_35 = arith.constant 0 : i32
    %c0_i32_36 = arith.constant 0 : i32
    %c0_i32_37 = arith.constant 0 : i32
    %58 = tpu.memref_slice %arg3[%c0_i32_36, %c0_i32_37] : memref<32x128xf32, #tpu.memory_space<any>> -> memref<1x128xf32, #tpu.memory_space<any>>
    %c0_i32_38 = arith.constant 0 : i32
    %c0_i32_39 = arith.constant 0 : i32
    %59 = tpu.memref_slice %arg5[%c0_i32_38, %c0_i32_39] : memref<128x128xf32, #tpu.memory_space<vmem>> -> memref<1x128xf32, #tpu.memory_space<vmem>>
    %60 = tpu.memref_slice %arg6[%c0_i32_35] : memref<8x!tpu.dma_semaphore, #tpu.memory_space<semaphore_mem>> -> memref<1x!tpu.dma_semaphore, #tpu.memory_space<semaphore_mem>>
    %61 = tpu.memref_squeeze %60 : memref<1x!tpu.dma_semaphore, #tpu.memory_space<semaphore_mem>> -> memref<!tpu.dma_semaphore, #tpu.memory_space<semaphore_mem>>
    tpu.wait_dma2 semaphore(%61 : memref<!tpu.dma_semaphore, #tpu.memory_space<semaphore_mem>>) src(%58 : memref<1x128xf32, #tpu.memory_space<any>>) dst(%59 : memref<1x128xf32, #tpu.memory_space<vmem>>)
    %c1_i32_40 = arith.constant 1 : i32
    %c0_i32_41 = arith.constant 0 : i32
    %c0_i32_42 = arith.constant 0 : i32
    %62 = tpu.memref_slice %arg3[%c0_i32_41, %c0_i32_42] : memref<32x128xf32, #tpu.memory_space<any>> -> memref<1x128xf32, #tpu.memory_space<any>>
    %c0_i32_43 = arith.constant 0 : i32
    %c0_i32_44 = arith.constant 0 : i32
    %63 = tpu.memref_slice %arg5[%c0_i32_43, %c0_i32_44] : memref<128x128xf32, #tpu.memory_space<vmem>> -> memref<1x128xf32, #tpu.memory_space<vmem>>
    %64 = tpu.memref_slice %arg6[%c1_i32_40] : memref<8x!tpu.dma_semaphore, #tpu.memory_space<semaphore_mem>> -> memref<1x!tpu.dma_semaphore, #tpu.memory_space<semaphore_mem>>
    %65 = tpu.memref_squeeze %64 : memref<1x!tpu.dma_semaphore, #tpu.memory_space<semaphore_mem>> -> memref<!tpu.dma_semaphore, #tpu.memory_space<semaphore_mem>>
    tpu.wait_dma2 semaphore(%65 : memref<!tpu.dma_semaphore, #tpu.memory_space<semaphore_mem>>) src(%62 : memref<1x128xf32, #tpu.memory_space<any>>) dst(%63 : memref<1x128xf32, #tpu.memory_space<vmem>>)
    %c2_i32_45 = arith.constant 2 : i32
    %c0_i32_46 = arith.constant 0 : i32
    %c0_i32_47 = arith.constant 0 : i32
    %66 = tpu.memref_slice %arg3[%c0_i32_46, %c0_i32_47] : memref<32x128xf32, #tpu.memory_space<any>> -> memref<1x128xf32, #tpu.memory_space<any>>
    %c0_i32_48 = arith.constant 0 : i32
    %c0_i32_49 = arith.constant 0 : i32
    %67 = tpu.memref_slice %arg5[%c0_i32_48, %c0_i32_49] : memref<128x128xf32, #tpu.memory_space<vmem>> -> memref<1x128xf32, #tpu.memory_space<vmem>>
    %68 = tpu.memref_slice %arg6[%c2_i32_45] : memref<8x!tpu.dma_semaphore, #tpu.memory_space<semaphore_mem>> -> memref<1x!tpu.dma_semaphore, #tpu.memory_space<semaphore_mem>>
    %69 = tpu.memref_squeeze %68 : memref<1x!tpu.dma_semaphore, #tpu.memory_space<semaphore_mem>> -> memref<!tpu.dma_semaphore, #tpu.memory_space<semaphore_mem>>
    tpu.wait_dma2 semaphore(%69 : memref<!tpu.dma_semaphore, #tpu.memory_space<semaphore_mem>>) src(%66 : memref<1x128xf32, #tpu.memory_space<any>>) dst(%67 : memref<1x128xf32, #tpu.memory_space<vmem>>)
    %c3_i32_50 = arith.constant 3 : i32
    %c0_i32_51 = arith.constant 0 : i32
    %c0_i32_52 = arith.constant 0 : i32
    %70 = tpu.memref_slice %arg3[%c0_i32_51, %c0_i32_52] : memref<32x128xf32, #tpu.memory_space<any>> -> memref<1x128xf32, #tpu.memory_space<any>>
    %c0_i32_53 = arith.constant 0 : i32
    %c0_i32_54 = arith.constant 0 : i32
    %71 = tpu.memref_slice %arg5[%c0_i32_53, %c0_i32_54] : memref<128x128xf32, #tpu.memory_space<vmem>> -> memref<1x128xf32, #tpu.memory_space<vmem>>
    %72 = tpu.memref_slice %arg6[%c3_i32_50] : memref<8x!tpu.dma_semaphore, #tpu.memory_space<semaphore_mem>> -> memref<1x!tpu.dma_semaphore, #tpu.memory_space<semaphore_mem>>
    %73 = tpu.memref_squeeze %72 : memref<1x!tpu.dma_semaphore, #tpu.memory_space<semaphore_mem>> -> memref<!tpu.dma_semaphore, #tpu.memory_space<semaphore_mem>>
    tpu.wait_dma2 semaphore(%73 : memref<!tpu.dma_semaphore, #tpu.memory_space<semaphore_mem>>) src(%70 : memref<1x128xf32, #tpu.memory_space<any>>) dst(%71 : memref<1x128xf32, #tpu.memory_space<vmem>>)
    %c4_i32_55 = arith.constant 4 : i32
    %c0_i32_56 = arith.constant 0 : i32
    %c0_i32_57 = arith.constant 0 : i32
    %74 = tpu.memref_slice %arg3[%c0_i32_56, %c0_i32_57] : memref<32x128xf32, #tpu.memory_space<any>> -> memref<1x128xf32, #tpu.memory_space<any>>
    %c0_i32_58 = arith.constant 0 : i32
    %c0_i32_59 = arith.constant 0 : i32
    %75 = tpu.memref_slice %arg5[%c0_i32_58, %c0_i32_59] : memref<128x128xf32, #tpu.memory_space<vmem>> -> memref<1x128xf32, #tpu.memory_space<vmem>>
    %76 = tpu.memref_slice %arg6[%c4_i32_55] : memref<8x!tpu.dma_semaphore, #tpu.memory_space<semaphore_mem>> -> memref<1x!tpu.dma_semaphore, #tpu.memory_space<semaphore_mem>>
    %77 = tpu.memref_squeeze %76 : memref<1x!tpu.dma_semaphore, #tpu.memory_space<semaphore_mem>> -> memref<!tpu.dma_semaphore, #tpu.memory_space<semaphore_mem>>
    tpu.wait_dma2 semaphore(%77 : memref<!tpu.dma_semaphore, #tpu.memory_space<semaphore_mem>>) src(%74 : memref<1x128xf32, #tpu.memory_space<any>>) dst(%75 : memref<1x128xf32, #tpu.memory_space<vmem>>)
    %c5_i32_60 = arith.constant 5 : i32
    %c0_i32_61 = arith.constant 0 : i32
    %c0_i32_62 = arith.constant 0 : i32
    %78 = tpu.memref_slice %arg3[%c0_i32_61, %c0_i32_62] : memref<32x128xf32, #tpu.memory_space<any>> -> memref<1x128xf32, #tpu.memory_space<any>>
    %c0_i32_63 = arith.constant 0 : i32
    %c0_i32_64 = arith.constant 0 : i32
    %79 = tpu.memref_slice %arg5[%c0_i32_63, %c0_i32_64] : memref<128x128xf32, #tpu.memory_space<vmem>> -> memref<1x128xf32, #tpu.memory_space<vmem>>
    %80 = tpu.memref_slice %arg6[%c5_i32_60] : memref<8x!tpu.dma_semaphore, #tpu.memory_space<semaphore_mem>> -> memref<1x!tpu.dma_semaphore, #tpu.memory_space<semaphore_mem>>
    %81 = tpu.memref_squeeze %80 : memref<1x!tpu.dma_semaphore, #tpu.memory_space<semaphore_mem>> -> memref<!tpu.dma_semaphore, #tpu.memory_space<semaphore_mem>>
    tpu.wait_dma2 semaphore(%81 : memref<!tpu.dma_semaphore, #tpu.memory_space<semaphore_mem>>) src(%78 : memref<1x128xf32, #tpu.memory_space<any>>) dst(%79 : memref<1x128xf32, #tpu.memory_space<vmem>>)
    %c6_i32_65 = arith.constant 6 : i32
    %c0_i32_66 = arith.constant 0 : i32
    %c0_i32_67 = arith.constant 0 : i32
    %82 = tpu.memref_slice %arg3[%c0_i32_66, %c0_i32_67] : memref<32x128xf32, #tpu.memory_space<any>> -> memref<1x128xf32, #tpu.memory_space<any>>
    %c0_i32_68 = arith.constant 0 : i32
    %c0_i32_69 = arith.constant 0 : i32
    %83 = tpu.memref_slice %arg5[%c0_i32_68, %c0_i32_69] : memref<128x128xf32, #tpu.memory_space<vmem>> -> memref<1x128xf32, #tpu.memory_space<vmem>>
    %84 = tpu.memref_slice %arg6[%c6_i32_65] : memref<8x!tpu.dma_semaphore, #tpu.memory_space<semaphore_mem>> -> memref<1x!tpu.dma_semaphore, #tpu.memory_space<semaphore_mem>>
    %85 = tpu.memref_squeeze %84 : memref<1x!tpu.dma_semaphore, #tpu.memory_space<semaphore_mem>> -> memref<!tpu.dma_semaphore, #tpu.memory_space<semaphore_mem>>
    tpu.wait_dma2 semaphore(%85 : memref<!tpu.dma_semaphore, #tpu.memory_space<semaphore_mem>>) src(%82 : memref<1x128xf32, #tpu.memory_space<any>>) dst(%83 : memref<1x128xf32, #tpu.memory_space<vmem>>)
    %c7_i32_70 = arith.constant 7 : i32
    %c0_i32_71 = arith.constant 0 : i32
    %c0_i32_72 = arith.constant 0 : i32
    %86 = tpu.memref_slice %arg3[%c0_i32_71, %c0_i32_72] : memref<32x128xf32, #tpu.memory_space<any>> -> memref<1x128xf32, #tpu.memory_space<any>>
    %c0_i32_73 = arith.constant 0 : i32
    %c0_i32_74 = arith.constant 0 : i32
    %87 = tpu.memref_slice %arg5[%c0_i32_73, %c0_i32_74] : memref<128x128xf32, #tpu.memory_space<vmem>> -> memref<1x128xf32, #tpu.memory_space<vmem>>
    %88 = tpu.memref_slice %arg6[%c7_i32_70] : memref<8x!tpu.dma_semaphore, #tpu.memory_space<semaphore_mem>> -> memref<1x!tpu.dma_semaphore, #tpu.memory_space<semaphore_mem>>
    %89 = tpu.memref_squeeze %88 : memref<1x!tpu.dma_semaphore, #tpu.memory_space<semaphore_mem>> -> memref<!tpu.dma_semaphore, #tpu.memory_space<semaphore_mem>>
    tpu.wait_dma2 semaphore(%89 : memref<!tpu.dma_semaphore, #tpu.memory_space<semaphore_mem>>) src(%86 : memref<1x128xf32, #tpu.memory_space<any>>) dst(%87 : memref<1x128xf32, #tpu.memory_space<vmem>>)
    %c0 = arith.constant 0 : index
    %c0_75 = arith.constant 0 : index
    %90 = vector.load %arg5[%c0, %c0_75] : memref<128x128xf32, #tpu.memory_space<vmem>>, vector<128x128xf32>
    %c0_76 = arith.constant 0 : index
    %c0_77 = arith.constant 0 : index
    %91 = vector.load %arg2[%c0_76, %c0_77] : memref<128x1xf32, #tpu.memory_space<vmem>>, vector<128x1xf32>
    %92 = vector.broadcast %91 : vector<128x1xf32> to vector<128x128xf32>
    %93 = arith.mulf %90, %92 : vector<128x128xf32>
    %c0_78 = arith.constant 0 : index
    %c0_79 = arith.constant 0 : index
    %94 = vector.load %arg4[%c0_78, %c0_79] : memref<128x128xf32, #tpu.memory_space<vmem>>, vector<128x128xf32>
    tpu.vector_store %arg4[%c0_78, %c0_79], %93 {strides = array<i32>} : memref<128x128xf32, #tpu.memory_space<vmem>>, vector<128x128xf32>,
    return
  }
  func.func @transform_0(%arg0: i32, %arg1: memref<128xi32, #tpu.memory_space<smem>>) -> (i32, i32) {
    %c0_i32 = arith.constant 0 : i32
    %c0_i32_0 = arith.constant 0 : i32
    return %arg0, %c0_i32 : i32, i32
  }
  func.func @transform_2(%arg0: i32, %arg1: memref<128xi32, #tpu.memory_space<smem>>) -> (i32, i32) {
    %c0_i32 = arith.constant 0 : i32
    %c0_i32_0 = arith.constant 0 : i32
    return %arg0, %c0_i32 : i32, i32
  }
}

</mosaic_0001>

<bundles_post_ra>
// kernel: tpu_custom_call.1
= control target key start
LH: loop header
LB: loop body
LE: loop exit
PB: predicated region body
PF: predicated region fallthrough
CT: control target
= control target key end

     0   :  { %s1069_s0 = inlined_call_operand.vmem [shape: s32[128], index: 0, kind: input, shape index: {}]   ;;  %s1070_s1 = inlined_call_operand.vmem [shape: f32[128,1], index: 1, kind: input, shape index: {}]   ;;  %s1071_s2 = inlined_call_operand.vmem [shape: f32[32,128], index: 2, kind: input, shape index: {}]   ;;  %s1072_s3 = inlined_call_operand.hbm [shape: f32[128,128], index: 3, kind: output, shape index: {}]  }
   0x1   :  { %s8_s14 = sshll.u32 %s1069_s0, 4  ;;  %s9_s14 = int_to_ptr.vmem [resolvable:$true] %s8_s14 }
   0x2   :  { %s877_s15 = scalar_lea.vmem %s9_s14, 16  ;;  %p882_p1 = scmp.lt.s32.totalorder %s9_s14, %s9_s14 }
   0x3   :  { %p878_p0 = scmp.ne.s32.totalorder %s9_s14, %s877_s15  ;;  %p883_p2 = scmp.lt.s32.totalorder %s877_s15, %s877_s15 }
   0x5   :  { %p884_p3 = por %p883_p2, %p882_p1 }
   0x7   :  { %p885_p4 = pnand %p884_p3, %p878_p0 }
   0x9   :  { %888 = shalt.err (!%p885_p4)  }
   0xa   :  { %s941_s16 = smov [#allocation5]  }
   0xb   :  { %11 = dma.vmem_to_smem %s9_s14, 16, %s941_s16, [#allocation4] }
   0xc   :  { %915 = dma.done.wait [#allocation4], 16 }
   0xd   :  { %916 = vsyncadd [#allocation4], 4294967280 }
   0xe   :  { %13 = sfence }
   0xf   :  { %14 = vsyncpa [#allocation7], 0  ;;  %s18_s17 = sld [smem:[#allocation5]] }
  0x15   :  { %s19_s20 = scalar_lea.vmem %s1071_s2, %s18_s17 }
  0x16   :  { %v37_v0 = vld [vmem:[%s19_s20] sm:$0x1] }
  0x17   :  { %38 = vst [vmem:[#allocation2] sm:$0x1] %v37_v0 }
  0x18   :  { %63 = vsyncadd [#allocation3], 16  ;;  %s839_s0 = sld [smem:[#allocation5 + $0x1]] }
  0x1e   :  { %s66_s23 = scalar_lea.vmem %s1071_s2, %s839_s0 }
  0x1f   :  { %v86_v1 = vld [vmem:[%s66_s23] sm:$0x1] }
  0x20   :  { %87 = vst [vmem:[#allocation2 + $0x1] sm:$0x1] %v86_v1 }
  0x21   :  { %112 = vsyncadd [#allocation3 + $0x1], 16  ;;  %s840_s24 = sld [smem:[#allocation5 + $0x2]] }
  0x27   :  { %s115_s27 = scalar_lea.vmem %s1071_s2, %s840_s24 }
  0x28   :  { %v135_v2 = vld [vmem:[%s115_s27] sm:$0x1] }
  0x29   :  { %136 = vst [vmem:[#allocation2 + $0x2] sm:$0x1] %v135_v2 }
  0x2a   :  { %161 = vsyncadd [#allocation3 + $0x2], 16  ;;  %s841_s28 = sld [smem:[#allocation5 + $0x3]] }
  0x30   :  { %s164_s4 = scalar_lea.vmem %s1071_s2, %s841_s28 }
  0x31   :  { %v184_v3 = vld [vmem:[%s164_s4] sm:$0x1] }
  0x32   :  { %185 = vst [vmem:[#allocation2 + $0x3] sm:$0x1] %v184_v3 }
  0x33   :  { %210 = vsyncadd [#allocation3 + $0x3], 16  ;;  %s842_s5 = sld [smem:[#allocation5 + $0x4]] }
  0x39   :  { %s213_s8 = scalar_lea.vmem %s1071_s2, %s842_s5 }
  0x3a   :  { %v233_v4 = vld [vmem:[%s213_s8] sm:$0x1] }
  0x3b   :  { %234 = vst [vmem:[#allocation2 + $0x4] sm:$0x1] %v233_v4 }
  0x3c   :  { %259 = vsyncadd [#allocation3 + $0x4], 16  ;;  %s843_s9 = sld [smem:[#allocation5 + $0x5]] }
  0x42   :  { %s262_s12 = scalar_lea.vmem %s1071_s2, %s843_s9 }
  0x43   :  { %v282_v5 = vld [vmem:[%s262_s12] sm:$0x1] }
  0x44   :  { %283 = vst [vmem:[#allocation2 + $0x5] sm:$0x1] %v282_v5 }
  0x45   :  { %308 = vsyncadd [#allocation3 + $0x5], 16  ;;  %s844_s13 = sld [smem:[#allocation5 + $0x6]] }
  0x4b   :  { %s311_s16 = scalar_lea.vmem %s1071_s2, %s844_s13 }
  0x4c   :  { %v331_v6 = vld [vmem:[%s311_s16] sm:$0x1] }
  0x4d   :  { %332 = vst [vmem:[#allocation2 + $0x6] sm:$0x1] %v331_v6 }
  0x4e   :  { %357 = vsyncadd [#allocation3 + $0x6], 16  ;;  %s845_s17 = sld [smem:[#allocation5 + $0x7]] }
  0x54   :  { %s360_s20 = scalar_lea.vmem %s1071_s2, %s845_s17 }
  0x55   :  { %v380_v7 = vld [vmem:[%s360_s20] sm:$0x1] }
  0x56   :  { %381 = vst [vmem:[#allocation2 + $0x7] sm:$0x1] %v380_v7 }
  0x57   :  { %406 = vsyncadd [#allocation3 + $0x7], 16  ;;  %s993_s0 = smov 0  }
  0x58 LB: > { %p413_p5 = scmp.lt.s32.totalorder %s939_s0, 0  ;;  %s414_s21 = ssub.s32 0, %s939_s0  ;;  %s939_s0 = sphi %s993_s0, %s412_s0  }
  0x59   : > { %s846_s22 = smin.u32 %s939_s0, %s414_s21 }
  0x5a   : > { %s416_s23 = sand.u32 7, %s846_s22  }
  0x5b   : > { %s417_s24 = ssub.s32 0, %s416_s23 }
  0x5c   : > { %s1074_s24 = smov (!%p413_p5, %s417_s24), %s416_s23 }
  0x5d   : > { %p848_p6 = scmp.lt.s32.totalorder %s1074_s24, 0  ;;  %s423_s25 = sadd.s32 8, %s1074_s24 }
  0x5f   : > { %s1076_s25 = smov (!%p848_p6, %s423_s25), %s1074_s24 }
  0x60   : > { %s425_s26 = scalar_lea.sflag [#allocation3], %s1076_s25 }
  0x61   : > { %917 = dma.done.wait %s425_s26, 16 }
  0x62   : > { %918 = vsyncadd %s425_s26, 4294967280  ;;  %s429_s27 = sadd.s32 8, %s939_s0  ;;  %s756_s10 = scalar_lea.vmem [#allocation2], %s939_s0 }
  0x63   : > { %s431_s28 = sld [smem:[#allocation5 + %s429_s27]]  ;;  %p432_p7 = scmp.lt.s32.totalorder %s429_s27, 0 }
  0x64   : > { %s433_s29 = ssub.s32 0, %s429_s27 }
  0x65   : > { %s849_s30 = smin.u32 %s433_s29, %s429_s27 }
  0x66   : > { %s435_s4 = sand.u32 7, %s849_s30  }
  0x67   : > { %s436_s5 = ssub.s32 0, %s435_s4 }
  0x68   : > { %s1078_s5 = smov (!%p432_p7, %s436_s5), %s435_s4 }
  0x69   : > { %s444_s8 = scalar_lea.vmem %s1071_s2, %s431_s28  ;;  %p851_p8 = scmp.lt.s32.totalorder %s1078_s5, 0 }
  0x6a   : > { %s442_s9 = sadd.s32 8, %s1078_s5  ;;  %v464_v8 = vld [vmem:[%s444_s8] sm:$0x1] }
  0x6b   : > { %853 = vst [vmem:[%s756_s10 + $0x8] sm:$0x1] %v464_v8  ;;  %s1080_s9 = smov (!%p851_p8, %s442_s9), %s1078_s5 }
  0x6c   : > { %s446_s11 = scalar_lea.sflag [#allocation3], %s1080_s9 }
  0x6d   : > { %490 = vsyncadd %s446_s11, 16  ;;  %s412_s0 = sadd.s32 1, %s939_s0  }
  0x6e   : > { %p409_p9 = scmp.ge.s32.totalorder %s412_s0, 120  }
  0x70   :  { %411 = sbr.rel (!%p409_p9) target bundleno = 88 (0x58), region = 424 }
  0x77   :  { %919 = dma.done.wait [#allocation3], 16 }
  0x78   :  { %920 = vsyncadd [#allocation3], 4294967280 }
  0x79   :  { %921 = dma.done.wait [#allocation3 + $0x1], 16 }
  0x7a   :  { %922 = vsyncadd [#allocation3 + $0x1], 4294967280 }
  0x7b   :  { %923 = dma.done.wait [#allocation3 + $0x2], 16 }
  0x7c   :  { %924 = vsyncadd [#allocation3 + $0x2], 4294967280 }
  0x7d   :  { %925 = dma.done.wait [#allocation3 + $0x3], 16 }
  0x7e   :  { %926 = vsyncadd [#allocation3 + $0x3], 4294967280 }
  0x7f   :  { %927 = dma.done.wait [#allocation3 + $0x4], 16 }
  0x80   :  { %928 = vsyncadd [#allocation3 + $0x4], 4294967280 }
  0x81   :  { %929 = dma.done.wait [#allocation3 + $0x5], 16 }
  0x82   :  { %930 = vsyncadd [#allocation3 + $0x5], 4294967280 }
  0x83   :  { %931 = dma.done.wait [#allocation3 + $0x6], 16 }
  0x84   :  { %932 = vsyncadd [#allocation3 + $0x6], 4294967280 }
  0x85   :  { %933 = dma.done.wait [#allocation3 + $0x7], 16 }
  0x86   :  { %934 = vsyncadd [#allocation3 + $0x7], 4294967280  ;;  %v942_v9 = vmov 0   ;;  %v526_v10 = vld [vmem:[%s1070_s1 + $0x10] sm:$0xff]  ;;  %v524_v11 = vld [vmem:[%s1070_s1] sm:$0xff] }
  0x87   :  { %876 = vset.pattern.permute.xlu1 %v942_v9  ;;  %875 = vset.pattern.permute.xlu0 %v942_v9  ;;  %v527_v12 = vld [vmem:[%s1070_s1 + $0x18] sm:$0xff]  ;;  %v525_v13 = vld [vmem:[%s1070_s1 + $0x8] sm:$0xff]  ;;  %v528_v15 = vld [vmem:[%s1070_s1 + $0x20] sm:$0xff] }
  0x88   :  { %552 = vperm.xlu1 %876, %v526_v10   ;;  %542 = vperm.xlu0 %875, %v524_v11   ;;  %v529_v14 = vld [vmem:[%s1070_s1 + $0x28] sm:$0xff]  ;;  %v531_v16 = vld [vmem:[%s1070_s1 + $0x38] sm:$0xff]  ;;  %v530_v17 = vld [vmem:[%s1070_s1 + $0x30] sm:$0xff] }
  0x89   :  { %v533_v18 = vld [vmem:[%s1070_s1 + $0x48] sm:$0xff]  ;;  %v532_v19 = vld [vmem:[%s1070_s1 + $0x40] sm:$0xff]  ;;  %v535_v20 = vld [vmem:[%s1070_s1 + $0x58] sm:$0xff] }
  0x8a   :  { %v534_v21 = vld [vmem:[%s1070_s1 + $0x50] sm:$0xff]  ;;  %v537_v22 = vld [vmem:[%s1070_s1 + $0x68] sm:$0xff]  ;;  %v536_v23 = vld [vmem:[%s1070_s1 + $0x60] sm:$0xff] }
  0x8b   :  { %v539_v24 = vld [vmem:[%s1070_s1 + $0x78] sm:$0xff]  ;;  %v538_v25 = vld [vmem:[%s1070_s1 + $0x70] sm:$0xff]  ;;  %v508_v27 = vld [vmem:[#allocation2] sm:$0xff]  ;;  %s943_s1 = smov [#allocation6]  }
  0x8c   :  { %557 = vperm.xlu1 %876, %v527_v12   ;;  %547 = vperm.xlu0 %875, %v525_v13   ;;  %v510_v26 = vld [vmem:[#allocation2 + $0x10] sm:$0xff]  ;;  %v511_v32 = vld [vmem:[#allocation2 + $0x18] sm:$0xff]  ;;  %v509_v33 = vld [vmem:[#allocation2 + $0x8] sm:$0xff]  ;;  %s657_s14 = sshll.u32 %s943_s1, 4  ;;  %s658_s14 = int_to_ptr.vmem [resolvable:$true] %s657_s14 }
  0x8d   :  { %v513_v38 = vld [vmem:[#allocation2 + $0x28] sm:$0xff]  ;;  %v512_v39 = vld [vmem:[#allocation2 + $0x20] sm:$0xff]  ;;  %v515_v44 = vld [vmem:[#allocation2 + $0x38] sm:$0xff]  ;;  %s889_s15 = scalar_lea.vmem %s658_s14, 2048  ;;  %p894_p11 = scmp.lt.s32.totalorder %s658_s14, %s658_s14 }
  0x8e   :  { %v514_v45 = vld [vmem:[#allocation2 + $0x30] sm:$0xff]  ;;  %v517_v50 = vld [vmem:[#allocation2 + $0x48] sm:$0xff]  ;;  %v516_v51 = vld [vmem:[#allocation2 + $0x40] sm:$0xff]  ;;  %p890_p10 = scmp.ne.s32.totalorder %s658_s14, %s889_s15  ;;  %p895_p12 = scmp.lt.s32.totalorder %s889_s15, %s889_s15 }
  0x8f   :  { %v519_v56 = vld [vmem:[#allocation2 + $0x58] sm:$0xff]  ;;  %v518_v57 = vld [vmem:[#allocation2 + $0x50] sm:$0xff]  ;;  %v521_v62 = vld [vmem:[#allocation2 + $0x68] sm:$0xff] }
  0x90   :  { %567 = vperm.xlu1 %876, %v529_v14   ;;  %562 = vperm.xlu0 %875, %v528_v15   ;;  %v520_v63 = vld [vmem:[#allocation2 + $0x60] sm:$0xff]  ;;  %v523_v4 = vld [vmem:[#allocation2 + $0x78] sm:$0xff]  ;;  %v522_v5 = vld [vmem:[#allocation2 + $0x70] sm:$0xff]  ;;  %p896_p13 = por %p895_p12, %p894_p11 }
  0x92   :  { %p897_p0 = pnand %p896_p13, %p890_p10 }
  0x94   :  { %577 = vperm.xlu1 %876, %v531_v16   ;;  %572 = vperm.xlu0 %875, %v530_v17  }
  0x98   :  { %587 = vperm.xlu1 %876, %v533_v18   ;;  %582 = vperm.xlu0 %875, %v532_v19  }
  0x9c   :  { %597 = vperm.xlu1 %876, %v535_v20   ;;  %592 = vperm.xlu0 %875, %v534_v21  }
  0xa0   :  { %607 = vperm.xlu1 %876, %v537_v22   ;;  %602 = vperm.xlu0 %875, %v536_v23  }
  0xa4   :  { %617 = vperm.xlu1 %876, %v539_v24   ;;  %612 = vperm.xlu0 %875, %v538_v25  }
 0x107   :  { %v553_v28 = vpop.permute.xlu1 %552  ;;  %v543_v29 = vpop.permute.xlu0 %542 }
 0x108   :  { %v622_v30 = vmul.f32 %v553_v28, %v510_v26  ;;  %v620_v31 = vmul.f32 %v543_v29, %v508_v27 }
 0x10a   :  { %638 = vst [vmem:[#allocation6 + $0x10] sm:$0xff] %v622_v30  ;;  %636 = vst [vmem:[#allocation6] sm:$0xff] %v620_v31 }
 0x10b   :  { %v558_v34 = vpop.permute.xlu1 %557  ;;  %v548_v35 = vpop.permute.xlu0 %547 }
 0x10c   :  { %v623_v36 = vmul.f32 %v558_v34, %v511_v32  ;;  %v621_v37 = vmul.f32 %v548_v35, %v509_v33 }
 0x10e   :  { %639 = vst [vmem:[#allocation6 + $0x18] sm:$0xff] %v623_v36  ;;  %637 = vst [vmem:[#allocation6 + $0x8] sm:$0xff] %v621_v37 }
 0x10f   :  { %v568_v40 = vpop.permute.xlu1 %567  ;;  %v563_v41 = vpop.permute.xlu0 %562 }
 0x110   :  { %v625_v42 = vmul.f32 %v568_v40, %v513_v38  ;;  %v624_v43 = vmul.f32 %v563_v41, %v512_v39 }
 0x112   :  { %641 = vst [vmem:[#allocation6 + $0x28] sm:$0xff] %v625_v42  ;;  %640 = vst [vmem:[#allocation6 + $0x20] sm:$0xff] %v624_v43 }
 0x113   :  { %v578_v46 = vpop.permute.xlu1 %577  ;;  %v573_v47 = vpop.permute.xlu0 %572 }
 0x114   :  { %v627_v48 = vmul.f32 %v578_v46, %v515_v44  ;;  %v626_v49 = vmul.f32 %v573_v47, %v514_v45 }
 0x116   :  { %643 = vst [vmem:[#allocation6 + $0x38] sm:$0xff] %v627_v48  ;;  %642 = vst [vmem:[#allocation6 + $0x30] sm:$0xff] %v626_v49 }
 0x117   :  { %v588_v52 = vpop.permute.xlu1 %587  ;;  %v583_v53 = vpop.permute.xlu0 %582 }
 0x118   :  { %v629_v54 = vmul.f32 %v588_v52, %v517_v50  ;;  %v628_v55 = vmul.f32 %v583_v53, %v516_v51 }
 0x11a   :  { %645 = vst [vmem:[#allocation6 + $0x48] sm:$0xff] %v629_v54  ;;  %644 = vst [vmem:[#allocation6 + $0x40] sm:$0xff] %v628_v55 }
 0x11b   :  { %v598_v58 = vpop.permute.xlu1 %597  ;;  %v593_v59 = vpop.permute.xlu0 %592 }
 0x11c   :  { %v631_v60 = vmul.f32 %v598_v58, %v519_v56  ;;  %v630_v61 = vmul.f32 %v593_v59, %v518_v57 }
 0x11e   :  { %647 = vst [vmem:[#allocation6 + $0x58] sm:$0xff] %v631_v60  ;;  %646 = vst [vmem:[#allocation6 + $0x50] sm:$0xff] %v630_v61 }
 0x11f   :  { %v608_v0 = vpop.permute.xlu1 %607  ;;  %v603_v1 = vpop.permute.xlu0 %602 }
 0x120   :  { %v633_v2 = vmul.f32 %v608_v0, %v521_v62  ;;  %v632_v3 = vmul.f32 %v603_v1, %v520_v63 }
 0x122   :  { %649 = vst [vmem:[#allocation6 + $0x68] sm:$0xff] %v633_v2  ;;  %648 = vst [vmem:[#allocation6 + $0x60] sm:$0xff] %v632_v3 }
 0x123   :  { %v618_v6 = vpop.permute.xlu1 %617  ;;  %v613_v7 = vpop.permute.xlu0 %612 }
 0x124   :  { %v635_v8 = vmul.f32 %v618_v6, %v523_v4  ;;  %v634_v9 = vmul.f32 %v613_v7, %v522_v5 }
 0x126   :  { %651 = vst [vmem:[#allocation6 + $0x78] sm:$0xff] %v635_v8  ;;  %650 = vst [vmem:[#allocation6 + $0x70] sm:$0xff] %v634_v9 }
 0x127   :  { %900 = shalt.err (!%p897_p0)
}
 0x128   :  { %s901_s18 = scalar_lea.hbm %s1072_s3, 2048 }
 0x129   :  { %p902_p1 = scmp.ne.s32.totalorder %s1072_s3, %s901_s18  ;;  %p905_p2 = scmp.lt.u32.totalorder %s901_s18, %s1072_s3 }
 0x12b   :  { %p907_p3 = pnand %p905_p2, %p902_p1 }
 0x12d   :  { %910 = shalt.err (!%p907_p3)
}
 0x12e   :  { %s944_s22 = smov 128   ;;  %s945_s23 = smov 8  }
 0x12f   :  { %663 = dma.vmem_to_hbm [thread:$0]  %s658_s14, 2048, %s1072_s3, [#allocation7], %s944_s22, %s944_s22, %s945_s23  }
 0x130   :  { %935 = dma.done.wait [#allocation7], 2048  }
 0x131   :  { %936 = vsyncadd [#allocation7], 4294965248 }
 0x132   :  { %667 = vsyncpa [#allocation7], 1 }
 0x133   :  { %668 = vsyncmov [#allocation3] }
 0x136   :  { %s669_s26 = vpop.sfrf %668 }
 0x137   :  { %p854_p4 = scmp.ne.s32.totalorder %s669_s26, 0 }
 0x139   :  { %673 = shalt.err (%p854_p4)  }
 0x13a   :  { %675 = vsyncmov [#allocation3 + $0x1] }
 0x13d   :  { %s676_s27 = vpop.sfrf %675 }
 0x13e   :  { %p855_p5 = scmp.ne.s32.totalorder %s676_s27, 0 }
 0x140   :  { %680 = shalt.err (%p855_p5)  }
 0x141   :  { %682 = vsyncmov [#allocation3 + $0x2] }
 0x144   :  { %s683_s28 = vpop.sfrf %682 }
 0x145   :  { %p856_p6 = scmp.ne.s32.totalorder %s683_s28, 0 }
 0x147   :  { %687 = shalt.err (%p856_p6)  }
 0x148   :  { %689 = vsyncmov [#allocation3 + $0x3] }
 0x14b   :  { %s690_s29 = vpop.sfrf %689 }
 0x14c   :  { %p857_p7 = scmp.ne.s32.totalorder %s690_s29, 0 }
 0x14e   :  { %694 = shalt.err (%p857_p7)  }
 0x14f   :  { %696 = vsyncmov [#allocation3 + $0x4] }
 0x152   :  { %s697_s3 = vpop.sfrf %696 }
 0x153   :  { %p858_p8 = scmp.ne.s32.totalorder %s697_s3, 0 }
 0x155   :  { %701 = shalt.err (%p858_p8)  }
 0x156   :  { %703 = vsyncmov [#allocation3 + $0x5] }
 0x159   :  { %s704_s30 = vpop.sfrf %703 }
 0x15a   :  { %p859_p9 = scmp.ne.s32.totalorder %s704_s30, 0 }
 0x15c   :  { %708 = shalt.err (%p859_p9)  }
 0x15d   :  { %710 = vsyncmov [#allocation3 + $0x6] }
 0x160   :  { %s711_s4 = vpop.sfrf %710 }
 0x161   :  { %p860_p10 = scmp.ne.s32.totalorder %s711_s4, 0 }
 0x163   :  { %715 = shalt.err (%p860_p10)  }
 0x164   :  { %717 = vsyncmov [#allocation3 + $0x7] }
 0x167   :  { %s718_s5 = vpop.sfrf %717 }
 0x168   :  { %p861_p11 = scmp.ne.s32.totalorder %s718_s5, 0 }
 0x16a   :  { %722 = shalt.err (%p861_p11)  }

</bundles_post_ra>
